<compile_context>
chip_gen: v7x
topology: tpu7x:2x2x1
jax: 0.10.0
libtpu: 0.0.40
codegen_flags: <defaults>
</compile_context>

<pallas_src>
import jax
import jax.numpy as jnp
from jax.experimental import pallas as pl
from jax.experimental.pallas import tpu as pltpu


# --------------------------------------------------------------------------- #
# Kernel
# --------------------------------------------------------------------------- #
def _proj_norm_kernel(x_ref, w_ref, b_ref, g_ref, beta_ref, o_ref):
    # x_ref:    (block_b, E)        image-embedding rows (matmul dtype, e.g. bf16)
    # w_ref:    (n_chunk, E)        nn.Linear weight rows for this token chunk
    # b_ref:    (1, n_chunk)        Linear bias slice (f32)
    # g_ref:    (1, D)              LayerNorm gamma (f32)
    # beta_ref: (1, D)              LayerNorm beta  (f32)
    # o_ref:    (block_b, n_chunk)  flat output block (n_chunk = tokens_per_step * D)
    n = w_ref.shape[0]
    d = g_ref.shape[1]
    tc = n // d  # tokens in this chunk (static, small)

    # Linear: x @ W^T, contracting x dim 1 with w dim 1 -> (block_b, n_chunk),
    # f32 accumulation on the MXU.  Weight stays in PyTorch (N, E) layout.
    z = jax.lax.dot_general(
        x_ref[...], w_ref[...],
        dimension_numbers=(((1,), (1,)), ((), ())),
        preferred_element_type=jnp.float32,
    )
    z = z + b_ref[...]                       # broadcast (1, n) over (block_b, n)

    g = g_ref[...]                            # (1, D)
    bt = beta_ref[...]                        # (1, D)

    # Per-token LayerNorm over D (torch default eps=1e-5).  Static, lane-aligned
    # slices (D is a multiple of 128 in practice) -> no reshape / relayout.
    for t in range(tc):
        seg = z[:, t * d:(t + 1) * d]                     # (block_b, D) f32
        mean = jnp.mean(seg, axis=-1, keepdims=True)
        ctr = seg - mean
        var = jnp.mean(ctr * ctr, axis=-1, keepdims=True)
        y = ctr * jax.lax.rsqrt(var + 1e-5) * g + bt
        o_ref[:, t * d:(t + 1) * d] = y.astype(o_ref.dtype)


# --------------------------------------------------------------------------- #
# Wrapper
# --------------------------------------------------------------------------- #
def prepare_proj_weight(w, matmul_dtype=jnp.bfloat16):
    """One-time weight prep (outside the hot path): cast to the matmul dtype.

    Keeps the PyTorch (N, E) layout; no transpose is ever materialized.
    """
    return jnp.asarray(w, dtype=matmul_dtype)


def _largest_divisor_leq(n, cap):
    cap = max(1, min(n, int(cap)))
    for k in range(cap, 0, -1):
        if n % k == 0:
            return k
    return 1


def _vmem_budget_bytes():
    """~5/8 of physical VMEM (v5e/v6e: ~80 MiB, v7x: ~40 MiB); safe fallback."""
    capacity = None
    try:
        info = pltpu.get_tpu_info()
        capacity = getattr(info, "vmem_capacity_bytes", None)
    except Exception:
        capacity = None
    if not capacity:
        capacity = 64 * 1024 * 1024  # conservative: assume v7x-sized VMEM
    return (int(capacity) * 5) // 8


def proj_model_forward(image_embeds, w_mm, b, gamma, beta, *,
                       clip_extra_context_tokens, cross_attention_dim,
                       block_b=None, tokens_per_step=None,
                       vmem_budget_bytes=None):
    """Pallas implementation of ProjModel.forward.

    image_embeds: (B, E) float32
    w_mm:         (T*D, E) pre-cast weight (see prepare_proj_weight; PyTorch layout)
    b:            (T*D,)  float32    (nn.Linear bias)
    gamma, beta:  (D,)    float32    (nn.LayerNorm affine params)
    returns:      (B, T, D) float32
    """
    B, E = image_embeds.shape
    T = clip_extra_context_tokens
    D = cross_attention_dim
    N = T * D
    assert w_mm.shape == (N, E) and b.shape == (N,)
    assert gamma.shape == (D,) and beta.shape == (D,)

    matmul_dtype = w_mm.dtype
    mm_item = jnp.dtype(matmul_dtype).itemsize
    out_dtype = image_embeds.dtype
    out_item = jnp.dtype(out_dtype).itemsize

    # Batch tiling: B maps to the MXU M / sublane axis.  Weight-DMA bound, so a
    # modest M tile (<=128) costs nothing on the MXU and saves VMEM.
    if block_b is None:
        block_b = B if B <= 128 else 128
    grid_b = pl.cdiv(B, block_b)

    if vmem_budget_bytes is None:
        vmem_budget_bytes = _vmem_budget_bytes()

    # Token (output-column) chunking: size against the FULL per-step footprint
    # (weight + x + output double-buffers + f32 temporaries), cap at cdiv(T, 2)
    # so the outer parallel axis has >=2 steps (megacore sharding of the weight
    # stream), and round down to a divisor of T (no padded/garbage tokens).
    fixed_bytes = 2 * block_b * E * mm_item + 4 * D * 4
    per_col_bytes = (2 * E * mm_item          # W^T columns, double-buffered
                     + 2 * block_b * out_item  # output block, double-buffered
                     + 2 * 4                   # bias, double-buffered
                     + 4 * block_b * 4)        # f32 z/ctr/y temporaries (slack)
    if tokens_per_step is None:
        avail = max(vmem_budget_bytes - fixed_bytes, D * per_col_bytes)
        budget_cap = max(1, avail // (D * per_col_bytes))
        megacore_cap = pl.cdiv(T, 2) if T > 1 else 1
        tokens_per_step = _largest_divisor_leq(T, min(budget_cap, megacore_cap))
    grid_t = pl.cdiv(T, tokens_per_step)
    n_chunk = tokens_per_step * D

    footprint = fixed_bytes + n_chunk * per_col_bytes
    vmem_limit_bytes = int(max(vmem_budget_bytes, footprint + (4 << 20)))

    # Lane-dense parameter layouts (tiny, per-call cost negligible).
    x_mm = image_embeds.astype(matmul_dtype)
    b_r = b.reshape(1, N).astype(jnp.float32)
    g_r = gamma.reshape(1, D).astype(jnp.float32)
    beta_r = beta.reshape(1, D).astype(jnp.float32)

    # Honest traffic estimate: weights read once (token axis outer), x re-read
    # per token chunk, output written once.
    cost = pl.CostEstimate(
        flops=2 * B * N * E,
        transcendentals=B * T,  # one rsqrt per normalized row
        bytes_accessed=(N * E * mm_item
                        + grid_t * B * E * mm_item
                        + (N + 2 * D) * 4
                        + B * N * out_item),
    )

    out_flat = pl.pallas_call(
        _proj_norm_kernel,
        out_shape=jax.ShapeDtypeStruct((B, N), out_dtype),
        grid_spec=pltpu.PrefetchScalarGridSpec(
            num_scalar_prefetch=0,
            # Token/weight axis OUTER, batch axis INNER: the weight block index
            # is constant across the inner loop -> W streamed from HBM once.
            grid=(grid_t, grid_b),
            in_specs=[
                pl.BlockSpec((block_b, E), lambda i, j: (j, 0)),   # x rows
                pl.BlockSpec((n_chunk, E), lambda i, j: (i, 0)),   # W row chunk
                pl.BlockSpec((1, n_chunk), lambda i, j: (0, i)),   # bias chunk
                pl.BlockSpec((1, D), lambda i, j: (0, 0)),         # gamma
                pl.BlockSpec((1, D), lambda i, j: (0, 0)),         # beta
            ],
            out_specs=pl.BlockSpec((block_b, n_chunk), lambda i, j: (i, j)[::-1]),
        ),
        compiler_params=pltpu.CompilerParams(
            dimension_semantics=("parallel", "parallel"),
            vmem_limit_bytes=vmem_limit_bytes),
        cost_estimate=cost,
    )(x_mm, w_mm, b_r, g_r, beta_r)

    # Free metadata reshape to the PyTorch output layout (B, T, D).
    return out_flat.reshape(B, T, D)


# --------------------------------------------------------------------------- #
# Reference (pure JAX) for validation
# --------------------------------------------------------------------------- #
def _reference(image_embeds, w, b, gamma, beta, T, D, matmul_dtype=None):
    if matmul_dtype is None:
        z = image_embeds @ w.T + b
    else:
        z = jnp.dot(image_embeds.astype(matmul_dtype), w.T.astype(matmul_dtype),
                    preferred_element_type=jnp.float32) + b
    z = z.reshape(-1, T, D)
    mean = jnp.mean(z, axis=-1, keepdims=True)
    var = jnp.mean((z - mean) ** 2, axis=-1, keepdims=True)
    return (z - mean) * jax.lax.rsqrt(var + 1e-5) * gamma + beta


if __name__ == "__main__":
    # Small-but-consistent shapes: batch=2, clip_embeddings_dim=128,
    # cross_attention_dim=256, clip_extra_context_tokens=4.
    B, E, D, T = 2, 128, 256, 4

    key = jax.random.PRNGKey(0)
    k_x, k_w, k_b = jax.random.split(key, 3)

    image_embeds = jax.random.normal(k_x, (B, E), dtype=jnp.float32)

    # Deterministic synthetic parameters (nn.Linear weight/bias; LayerNorm affine).
    w = jax.random.normal(k_w, (T * D, E), dtype=jnp.float32) * (1.0 / jnp.sqrt(E))
    b = jax.random.normal(k_b, (T * D,), dtype=jnp.float32) * 0.02
    gamma = jnp.ones((D,), dtype=jnp.float32)   # torch LayerNorm default init
    beta = jnp.zeros((D,), dtype=jnp.float32)

    # One-time weight prep (outside the hot path): bf16 cast, PyTorch layout.
    w_mm = prepare_proj_weight(w)

    out = proj_model_forward(
        image_embeds, w_mm, b, gamma, beta,
        clip_extra_context_tokens=T, cross_attention_dim=D)
    out = jax.block_until_ready(out)
    assert out.shape == (B, T, D), out.shape

    # Tight check against a reference that uses the same bf16 matmul inputs.
    ref_bf16 = _reference(image_embeds, w, b, gamma, beta, T, D,
                          matmul_dtype=jnp.bfloat16)
    assert jnp.allclose(out, ref_bf16, atol=2e-3, rtol=2e-3), \
        "mismatch vs bf16-matmul reference"

    # Loose check against the full-f32 PyTorch-semantics reference
    # (bf16 x/W rounding gives ~1e-2 abs error on the O(1) LayerNorm output).
    ref_f32 = _reference(image_embeds, w, b, gamma, beta, T, D)
    assert jnp.allclose(out, ref_f32, atol=3e-2, rtol=3e-2), \
        "mismatch vs f32 reference"

    print("KERNEL_OK")
</pallas_src>

<mosaic_0001>
module attributes {stable_mosaic.version = 11 : i64} {
  func.func @_proj_norm_kernel(%arg0: i32, %arg1: i32, %arg2: memref<2x128xbf16, #tpu.memory_space<vmem>>, %arg3: memref<512x128xbf16, #tpu.memory_space<vmem>>, %arg4: memref<1x512xf32, #tpu.memory_space<vmem>>, %arg5: memref<1x256xf32, #tpu.memory_space<vmem>>, %arg6: memref<1x256xf32, #tpu.memory_space<vmem>>, %arg7: memref<2x512xf32, #tpu.memory_space<vmem>>) attributes {dimension_semantics = [#tpu.dimension_semantics<parallel>, #tpu.dimension_semantics<parallel>], iteration_bounds = array<i64: 2, 1>, scalar_prefetch = 0 : i64, scratch_operands = 0 : i64, tpu.core_type = #tpu.core_type<tc>, window_params = [{transform_indices = @transform_0, window_bounds = array<i64: 2, 128>}, {transform_indices = @transform_1, window_bounds = array<i64: 512, 128>}, {transform_indices = @transform_2, window_bounds = array<i64: 1, 512>}, {pipeline_mode = #tpu.pipeline_mode<synchronous>, transform_indices = @transform_3, window_bounds = array<i64: 1, 256>}, {pipeline_mode = #tpu.pipeline_mode<synchronous>, transform_indices = @transform_4, window_bounds = array<i64: 1, 256>}, {transform_indices = @transform_5, window_bounds = array<i64: 2, 512>}]} {
    %c0 = arith.constant 0 : index
    %c0_0 = arith.constant 0 : index
    %0 = vector.load %arg2[%c0, %c0_0] : memref<2x128xbf16, #tpu.memory_space<vmem>>, vector<2x128xbf16>
    %c0_1 = arith.constant 0 : index
    %c0_2 = arith.constant 0 : index
    %1 = vector.load %arg3[%c0_1, %c0_2] : memref<512x128xbf16, #tpu.memory_space<vmem>>, vector<512x128xbf16>
    %cst = arith.constant dense<0.000000e+00> : vector<2x512xf32>
    %2 = tpu.matmul %0, %1, %cst {dimension_numbers = #tpu.dot_dimension_numbers<[1], [1], [0], [0], [0, 0, 1, 0], [], []>} : vector<2x128xbf16>, vector<512x128xbf16>, vector<2x512xf32> -> vector<2x512xf32>
    %c0_3 = arith.constant 0 : index
    %c0_4 = arith.constant 0 : index
    %3 = vector.load %arg4[%c0_3, %c0_4] : memref<1x512xf32, #tpu.memory_space<vmem>>, vector<1x512xf32>
    %4 = vector.broadcast %3 : vector<1x512xf32> to vector<2x512xf32>
    %5 = arith.addf %2, %4 : vector<2x512xf32>
    %c0_5 = arith.constant 0 : index
    %c0_6 = arith.constant 0 : index
    %6 = vector.load %arg5[%c0_5, %c0_6] : memref<1x256xf32, #tpu.memory_space<vmem>>, vector<1x256xf32>
    %c0_7 = arith.constant 0 : index
    %c0_8 = arith.constant 0 : index
    %7 = vector.load %arg6[%c0_7, %c0_8] : memref<1x256xf32, #tpu.memory_space<vmem>>, vector<1x256xf32>
    %8 = vector.extract_strided_slice %5 {offsets = [0, 0], sizes = [2, 256], strides = [1, 1]} : vector<2x512xf32> to vector<2x256xf32>
    %cst_9 = arith.constant dense<0.000000e+00> : vector<2xf32>
    %9 = vector.multi_reduction <add>, %8, %cst_9 [1] : vector<2x256xf32> to vector<2xf32>
    %10 = vector.shape_cast %9 : vector<2xf32> to vector<2x1xf32>
    %cst_10 = arith.constant 2.560000e+02 : f32
    %11 = vector.broadcast %cst_10 : f32 to vector<2x1xf32>
    %12 = arith.divf %10, %11 : vector<2x1xf32>
    %13 = vector.broadcast %12 : vector<2x1xf32> to vector<2x256xf32>
    %14 = arith.subf %8, %13 : vector<2x256xf32>
    %15 = arith.mulf %14, %14 : vector<2x256xf32>
    %cst_11 = arith.constant dense<0.000000e+00> : vector<2xf32>
    %16 = vector.multi_reduction <add>, %15, %cst_11 [1] : vector<2x256xf32> to vector<2xf32>
    %17 = vector.shape_cast %16 : vector<2xf32> to vector<2x1xf32>
    %cst_12 = arith.constant 2.560000e+02 : f32
    %18 = vector.broadcast %cst_12 : f32 to vector<2x1xf32>
    %19 = arith.divf %17, %18 : vector<2x1xf32>
    %cst_13 = arith.constant 9.99999974E-6 : f32
    %20 = vector.broadcast %cst_13 : f32 to vector<2x1xf32>
    %21 = arith.addf %19, %20 : vector<2x1xf32>
    %22 = math.rsqrt %21 : vector<2x1xf32>
    %23 = vector.broadcast %22 : vector<2x1xf32> to vector<2x256xf32>
    %24 = arith.mulf %14, %23 : vector<2x256xf32>
    %25 = vector.broadcast %6 : vector<1x256xf32> to vector<2x256xf32>
    %26 = arith.mulf %24, %25 : vector<2x256xf32>
    %27 = vector.broadcast %7 : vector<1x256xf32> to vector<2x256xf32>
    %28 = arith.addf %26, %27 : vector<2x256xf32>
    %c0_14 = arith.constant 0 : index
    %c0_15 = arith.constant 0 : index
    %29 = vector.load %arg7[%c0_14, %c0_15] : memref<2x512xf32, #tpu.memory_space<vmem>>, vector<2x256xf32>
    tpu.vector_store %arg7[%c0_14, %c0_15], %28 {strides = array<i32>} : memref<2x512xf32, #tpu.memory_space<vmem>>, vector<2x256xf32>,
    %30 = vector.extract_strided_slice %5 {offsets = [0, 256], sizes = [2, 256], strides = [1, 1]} : vector<2x512xf32> to vector<2x256xf32>
    %cst_16 = arith.constant dense<0.000000e+00> : vector<2xf32>
    %31 = vector.multi_reduction <add>, %30, %cst_16 [1] : vector<2x256xf32> to vector<2xf32>
    %32 = vector.shape_cast %31 : vector<2xf32> to vector<2x1xf32>
    %cst_17 = arith.constant 2.560000e+02 : f32
    %33 = vector.broadcast %cst_17 : f32 to vector<2x1xf32>
    %34 = arith.divf %32, %33 : vector<2x1xf32>
    %35 = vector.broadcast %34 : vector<2x1xf32> to vector<2x256xf32>
    %36 = arith.subf %30, %35 : vector<2x256xf32>
    %37 = arith.mulf %36, %36 : vector<2x256xf32>
    %cst_18 = arith.constant dense<0.000000e+00> : vector<2xf32>
    %38 = vector.multi_reduction <add>, %37, %cst_18 [1] : vector<2x256xf32> to vector<2xf32>
    %39 = vector.shape_cast %38 : vector<2xf32> to vector<2x1xf32>
    %cst_19 = arith.constant 2.560000e+02 : f32
    %40 = vector.broadcast %cst_19 : f32 to vector<2x1xf32>
    %41 = arith.divf %39, %40 : vector<2x1xf32>
    %cst_20 = arith.constant 9.99999974E-6 : f32
    %42 = vector.broadcast %cst_20 : f32 to vector<2x1xf32>
    %43 = arith.addf %41, %42 : vector<2x1xf32>
    %44 = math.rsqrt %43 : vector<2x1xf32>
    %45 = vector.broadcast %44 : vector<2x1xf32> to vector<2x256xf32>
    %46 = arith.mulf %36, %45 : vector<2x256xf32>
    %47 = vector.broadcast %6 : vector<1x256xf32> to vector<2x256xf32>
    %48 = arith.mulf %46, %47 : vector<2x256xf32>
    %49 = vector.broadcast %7 : vector<1x256xf32> to vector<2x256xf32>
    %50 = arith.addf %48, %49 : vector<2x256xf32>
    %c0_21 = arith.constant 0 : index
    %c256 = arith.constant 256 : index
    %51 = vector.load %arg7[%c0_21, %c256] : memref<2x512xf32, #tpu.memory_space<vmem>>, vector<2x256xf32>
    tpu.vector_store %arg7[%c0_21, %c256], %50 {strides = array<i32>} : memref<2x512xf32, #tpu.memory_space<vmem>>, vector<2x256xf32>,
    return
  }
  func.func @transform_0(%arg0: i32, %arg1: i32) -> (i32, i32) {
    %c0_i32 = arith.constant 0 : i32
    %c0_i32_0 = arith.constant 0 : i32
    return %arg1, %c0_i32 : i32, i32
  }
  func.func @transform_1(%arg0: i32, %arg1: i32) -> (i32, i32) {
    %c0_i32 = arith.constant 0 : i32
    %c0_i32_0 = arith.constant 0 : i32
    return %arg0, %c0_i32 : i32, i32
  }
  func.func @transform_2(%arg0: i32, %arg1: i32) -> (i32, i32) {
    %c0_i32 = arith.constant 0 : i32
    %c0_i32_0 = arith.constant 0 : i32
    return %c0_i32, %arg0 : i32, i32
  }
  func.func @transform_3(%arg0: i32, %arg1: i32) -> (i32, i32) {
    %c0_i32 = arith.constant 0 : i32
    %c0_i32_0 = arith.constant 0 : i32
    %c0_i32_1 = arith.constant 0 : i32
    return %c0_i32, %c0_i32_0 : i32, i32
  }
  func.func @transform_4(%arg0: i32, %arg1: i32) -> (i32, i32) {
    %c0_i32 = arith.constant 0 : i32
    %c0_i32_0 = arith.constant 0 : i32
    %c0_i32_1 = arith.constant 0 : i32
    return %c0_i32, %c0_i32_0 : i32, i32
  }
  func.func @transform_5(%arg0: i32, %arg1: i32) -> (i32, i32) {
    %c0_i32 = arith.constant 0 : i32
    return %arg1, %arg0 : i32, i32
  }
}

</mosaic_0001>

<bundles_post_ra>
// kernel: tpu_custom_call.1
= control target key start
LH: loop header
LB: loop body
LE: loop exit
PB: predicated region body
PF: predicated region fallthrough
CT: control target
= control target key end

     0   :  { %s1632_s0 = inlined_call_operand.hbm [shape: bf16[2,128], index: 0, kind: input, shape index: {}]   ;;  %s1633_s1 = inlined_call_operand.hbm [shape: bf16[1024,128], index: 1, kind: input, shape index: {}]   ;;  %s1634_s2 = inlined_call_operand.hbm [shape: f32[1,1024], index: 2, kind: input, shape index: {}]   ;;  %s1635_s3 = inlined_call_operand.vmem [shape: f32[1,256], index: 3, kind: input, shape index: {}]   ;;  %s1636_s4 = inlined_call_operand.vmem [shape: f32[1,256], index: 4, kind: input, shape index: {}]   ;;  %s1637_s5 = inlined_call_operand.hbm [shape: f32[2,1024], index: 5, kind: output, shape index: {}]  }
   0x1   :  { %1647 = sst [smem:[#allocation15_spill]] %s1633_s1 }
   0x2   :  { %10 = vsyncpa [#allocation3], 0 }
   0x3   :  { %11 = vsyncpa [#allocation6], 0 }
   0x4   :  { %13 = vsyncpa [#allocation6 + $0x1], 0 }
   0x5   :  { %14 = vsyncpa [#allocation4], 0 }
   0x6   :  { %16 = vsyncpa [#allocation4 + $0x1], 0  ;;  %s1329_s18 = smov 0   ;;  %s1331_s19 = smov 0  }
   0x7   :  { %s1333_s20 = smov 0   ;;  %s1335_s21 = smov 0  }
   0x8   :  { %s1337_s22 = smov 0   ;;  %s1339_s23 = smov 0  }
   0x9 LB: > { %1648 = sst [smem:[#allocation12_spill]] %s1287_s22  ;;  %s34_s24 = sadd.s32 1, %s1287_s22  ;;  %s1291_s23 = sphi %s1339_s23, %s22_s23   ;;  %s1287_s22 = sphi %s1337_s22, %s1670_s22   ;;  %s1283_s21 = sphi %s1335_s21, %s1669_s21   ;;  %s1279_s20 = sphi %s1333_s20, %s1673_s20   ;;  %s1275_s19 = sphi %s1331_s19, %s1672_s19   ;;  %s1271_s18 = sphi %s1329_s18, %s1671_s18  }
   0xa   : > { %s67_s25 = sadd.s32 1, %s1279_s20  ;;  %p36_p0 = scmp.ge.s32.totalorder %s34_s24, 2 }
   0xb   : > { %p74_p1 = scmp.ne.s32.totalorder %s1279_s20, %s1275_s19  ;;  %p75_p2 = scmp.eq.s32.totalorder %s1291_s23, 0 }
   0xc   : > { %s1675_s24 = smov (%p36_p0, %s34_s24), 0  ;;  %p1027_p5 = scmp.lt.s32.totalorder %s1291_s23, 2 }
   0xd   : > { %1649 = sst [smem:[#allocation13_spill]] %s1675_s24  ;;  %p76_p4 = por %p75_p2, %p74_p1 }
   0xe   : > { %s64_s26 = ssub.s32 %s1287_s22, %s1675_s24  ;;  %s219_s27 = sand.u32 1, %s1291_s23  }
   0xf   : > { %p65_p6 = scmp.eq.s32.totalorder %s64_s26, 0  ;;  %s221_s28 = sand.u32 1, %s1279_s20  }
  0x10   : > { %s962_s29 = sshll.u32 %s1287_s22, 12  ;;  %s912_s6 = sshll.u32 %s221_s28, 8 }
  0x11   : > { %s1377_s30 = scalar_select %p65_p6, %s1279_s20, %s67_s25  }
  0x12   : > { %s1651_s1 = sld [smem:[#allocation15_spill]]  ;;  %p1386_p7 = pnand %p1027_p5, %p76_p4 }
  0x13   : > { %1650 = sst [smem:[#allocation14_spill]] %s1377_s30  ;;  %s223_s11 = scalar_lea.vmem [#allocation5], %s912_s6 }
  0x14   : > { %s1652_s10 = scalar_select %p1386_p7, 1, 0 }
  0x15   : > { %s230_s12 = sshll.u32 %s223_s11, 4  ;;  %s1392_s13 = scalar_lea.sflag [#allocation6], %s219_s27  ;;  %s1390_s12 = int_to_ptr.vmem [resolvable:$true] %s230_s12 }
  0x16   : > { %p1641_p9 = pneg %p1386_p7 }
  0x18   : > { %s1384_s9 = scalar_lea.hbm %s1651_s1, %s962_s29  ;;  %s1122_s17 = scalar_lea.hbm %s1651_s1, 8192 }
  0x19   : > { %s1117_s14 = scalar_lea.hbm %s1384_s9, 4096  ;;  %p1123_p12 = scmp.lt.u32.totalorder %s1384_s9, %s1651_s1 }
  0x1a   : > { %p1118_p8 = scmp.ne.s32.totalorder %s1384_s9, %s1117_s14  ;;  %p1124_p13 = scmp.lt.u32.totalorder %s1122_s17, %s1117_s14 }
  0x1b   : > { %p1126_p2 = scmp.lt.u32.totalorder %s1117_s14, %s1384_s9 }
  0x1c   : > { %p1120_p10 = pnand %p1641_p9, %p1118_p8  ;;  %p1125_p0 = por %p1124_p13, %p1123_p12 }
  0x1e   : > { %p1121_p11 = pneg %p1120_p10  ;;  %p1127_p4 = por %p1126_p2, %p1125_p0 }
  0x20   : > { %p1128_p5 = pnand %p1127_p4, %p1121_p11 }
  0x22   : > { %1131 = shalt.err (!%p1128_p5)
}
  0x23   : > { %s1132_s27 = scalar_lea.vmem %s1390_s12, 4096  ;;  %s1293_s29 = smov [#allocation5]  }
  0x24   : > { %p1133_p6 = scmp.ne.s32.totalorder %s1390_s12, %s1132_s27  ;;  %s1137_s6 = sshll.u32 %s1293_s29, 4  ;;  %s1138_s6 = int_to_ptr.vmem [resolvable:$false] %s1137_s6 }
  0x25   : > { %s1139_s7 = scalar_lea.vmem %s1138_s6, 8192  ;;  %p1140_p3 = scmp.lt.s32.totalorder %s1390_s12, %s1138_s6 }
  0x26   : > { %p1135_p8 = pnand %p1133_p6, %p1641_p9  ;;  %p1141_p12 = scmp.lt.s32.totalorder %s1139_s7, %s1132_s27 }
  0x28   : > { %p1136_p10 = pneg %p1135_p8  ;;  %p1142_p13 = por %p1141_p12, %p1140_p3 }
  0x2a   : > { %p1143_p0 = pnand %p1142_p13, %p1136_p10 }
  0x2c   : > { %1146 = shalt.err (!%p1143_p0)
}
  0x2d   : > { %s1294_s8 = smov 64   ;;  %s1295_s11 = smov 4  }
  0x2e   : > { %1018 = dma.hbm_to_vmem [thread:$0]  (!%p1386_p7), %s1384_s9, 4096, %s1390_s12, %s1392_s13, %s1294_s8, %s1294_s8, %s1295_s11  }
  0x2f   : > { %s1421_s14 = sadd.s32 4294967295, %s1291_s23   ;;  %s908_s15 = sadd.s32 4294967294, %s1291_s23  }
  0x30   : > { %p80_p3 = scmp.ne.s32.totalorder %s1275_s19, %s1271_s18  ;;  %p1640_p11 = scmp.eq.s32.totalorder %s1421_s14, 0 }
  0x31   : > { %p174_p2 = scmp.eq.s32.totalorder %s1421_s14, 1  ;;  %p180_p4 = scmp.eq.s32.totalorder %s908_s15, 1 }
  0x32   : > { %p909_p5 = scmp.ge.s32.totalorder %s1291_s23, 1  ;;  %p1431_p6 = por %p1640_p11, %p80_p3 }
  0x33   : > { %p1438_p8 = por %p174_p2, %p74_p1  ;;  %p1442_p10 = por %p180_p4, %p80_p3 }
  0x34   : > { %s1653_s16 = scalar_select %p1431_p6, 1, 0 }
  0x35   : > { %s1654_s9 = scalar_select %p1438_p8, 1, 0 }
  0x36   : > { %s1655_s12 = scalar_select %p1442_p10, 1, 0 }
  0x37   : > { %p187_p12 = scmp.lt.s32.totalorder %s1291_s23, 3  ;;  %s1296_s25 = smov [#allocation2]  }
  0x38   : > { %s202_s26 = sshll.u32 %s1296_s25, 4  ;;  %s915_s27 = sshll.u32 %s221_s28, 2  ;;  %s203_s26 = int_to_ptr.vmem [resolvable:$true] %s202_s26 }
  0x39   : > { %p1447_p13 = pnand %p909_p5, %p187_p12  ;;  %s963_s29 = sshll.u32 %s1287_s22, 6 }
  0x3a   : > { %s244_s6 = scalar_lea.vmem [#allocation7], %s915_s27  ;;  %s1465_s1 = scalar_lea.hbm %s1634_s2, %s963_s29 }
  0x3b   : > { %s1656_s17 = scalar_select %p1447_p13, 1, 0 }
  0x3c   : > { %p1011_p0 = pneg %p1447_p13  ;;  %s252_s7 = sshll.u32 %s244_s6, 4  ;;  %s1467_s7 = int_to_ptr.vmem [resolvable:$true] %s252_s7 }
  0x3d   : > { %s1147_s24 = scalar_lea.hbm %s1632_s0, 16 }
  0x3e   : > { %p1458_p1 = pnand %p1011_p0, %p1640_p11  ;;  %p1148_p3 = scmp.ne.s32.totalorder %s1632_s0, %s1147_s24 }
  0x3f   : > { %p1154_p12 = scmp.lt.u32.totalorder %s1147_s24, %s1632_s0 }
  0x40   : > { %p1149_p2 = pneg %p1458_p1 }
  0x42   : > { %p1150_p4 = pnand %p1149_p2, %p1148_p3 }
  0x44   : > { %p1151_p5 = pneg %p1150_p4 }
  0x46   : > { %p1156_p0 = pnand %p1154_p12, %p1151_p5 }
  0x48   : > { %1159 = shalt.err (!%p1156_p0)
}
  0x49   : > { %s1160_s29 = scalar_lea.vmem %s203_s26, 16  ;;  %s1167_s11 = scalar_lea.vmem %s203_s26, 32 }
  0x4a   : > { %p1161_p11 = scmp.ne.s32.totalorder %s203_s26, %s1160_s29  ;;  %p1168_p8 = scmp.lt.s32.totalorder %s203_s26, %s203_s26 }
  0x4b   : > { %p1169_p6 = scmp.lt.s32.totalorder %s1167_s11, %s1160_s29 }
  0x4c   : > { %p1163_p9 = pnand %p1161_p11, %p1149_p2 }
  0x4d   : > { %p1170_p13 = por %p1169_p6, %p1168_p8 }
  0x4e   : > { %p1164_p10 = pneg %p1163_p9 }
  0x50   : > { %p1171_p7 = pnand %p1170_p13, %p1164_p10 }
  0x52   : > { %1174 = shalt.err (!%p1171_p7)
}
  0x53   : > { %1014 = dma.hbm_to_vmem [thread:$0]  (!%p1458_p1), %s1632_s0, 16, %s203_s26, [#allocation3]  }
  0x54   : > { %s1175_s22 = scalar_lea.hbm %s1465_s1, 64  ;;  %p1658_p9 = scmp.ne.s32.totalorder %s1652_s10, 0 }
  0x55   : > { %p1176_p11 = scmp.ne.s32.totalorder %s1465_s1, %s1175_s22  ;;  %s1180_s25 = scalar_lea.hbm %s1634_s2, 128 }
  0x56   : > { %p1659_p3 = pneg %p1658_p9  ;;  %p1181_p7 = scmp.lt.u32.totalorder %s1465_s1, %s1634_s2 }
  0x57   : > { %p1182_p6 = scmp.lt.u32.totalorder %s1180_s25, %s1175_s22  ;;  %p1184_p10 = scmp.lt.u32.totalorder %s1175_s22, %s1465_s1 }
  0x58   : > { %p1178_p2 = pnand %p1176_p11, %p1659_p3 }
  0x59   : > { %p1183_p8 = por %p1182_p6, %p1181_p7 }
  0x5a   : > { %p1179_p4 = pneg %p1178_p2 }
  0x5b   : > { %p1185_p13 = por %p1184_p10, %p1183_p8 }
  0x5d   : > { %p1186_p5 = pnand %p1185_p13, %p1179_p4 }
  0x5f   : > { %1189 = shalt.err (!%p1186_p5)
}
  0x60   : > { %s1190_s26 = scalar_lea.vmem %s1467_s7, 64  ;;  %p1660_p12 = pmov %p1659_p3 }
  0x61   : > { %p1191_p1 = scmp.ne.s32.totalorder %s1467_s7, %s1190_s26  ;;  %s1297_s6 = smov [#allocation7]  }
  0x62   : > { %s1195_s29 = sshll.u32 %s1297_s6, 4  ;;  %s1196_s29 = int_to_ptr.vmem [resolvable:$false] %s1195_s29 }
  0x63   : > { %p1193_p0 = pnand %p1191_p1, %p1660_p12  ;;  %s1197_s11 = scalar_lea.vmem %s1196_s29, 128 }
  0x64   : > { %p1198_p3 = scmp.lt.s32.totalorder %s1467_s7, %s1196_s29  ;;  %p1199_p2 = scmp.lt.s32.totalorder %s1197_s11, %s1190_s26 }
  0x65   : > { %p1194_p11 = pneg %p1193_p0 }
  0x66   : > { %p1200_p7 = por %p1199_p2, %p1198_p3 }
  0x68   : > { %p1201_p6 = pnand %p1200_p7, %p1194_p11 }
  0x6a   : > { %1204 = shalt.err (!%p1201_p6)
}
  0x6b   : > { %1021 = dma.hbm_to_vmem [thread:$0]  (!%p1658_p9), %s1465_s1, 64, %s1467_s7, %s1392_s13  }
  0x6c   : > { %p1661_p4 = scmp.ne.s32.totalorder %s1656_s17, 0 }
  0x6d   : > { %p1662_p8 = scmp.eq.s32.totalorder (!%p1661_p4), %s1421_s14, 0 }
  0x6e   : > { %261 = sbr.rel (%p1661_p4) target bundleno = 740 (0x2e4), region = 40 }
  0x75   : > { %1258 = dma.done.wait (%p1662_p8), [#allocation3], 16   ;;  %p1663_p10 = pmov %p1662_p8 }
  0x76   : > { %s267_s15 = sand.u32 1, %s1421_s14   ;;  %s1517_s28 = sand.u32 1, %s1275_s19  }
  0x77   : > { %1260 = vsyncadd (%p1663_p10), [#allocation3], 4294967280  ;;  %s920_s10 = sshll.u32 %s1517_s28, 8  ;;  %s268_s22 = scalar_lea.sflag [#allocation6], %s267_s15 }
  0x78   : > { %s1520_s24 = scalar_lea.vmem [#allocation5], %s920_s10  ;;  %p1664_p9 = scmp.ne.s32.totalorder %s1653_s16, 0 }
  0x7a   : > { %1262 = dma.done.wait (%p1664_p9), %s268_s22, 4160  }
  0x7b   : > { %1264 = vsyncadd (%p1664_p9), %s268_s22, 4294963136  ;;  %v1081_v0 = vld [vmem:[%s1520_s24 + $0x40] sm:$0xff]   ;;  %v1085_v4 = vld [vmem:[%s1520_s24 + $0x48] sm:$0xff]   ;;  %v383_v33 = vlaneseq  ;;  %s921_s1 = sshll.u32 %s1517_s28, 2  ;;  %vm679_vm0 = vcmask 1041408   ;;  %s922_s30 = sshll.u32 %s1517_s28, 3 }
  0x7c   : > { %v1082_v1 = vld [vmem:[%s1520_s24] sm:$0xff]   ;;  %965 = vmatprep.subr.bf16.mxu0 %v1081_v0  ;;  %v1087_v5 = vld [vmem:[%s1520_s24 + $0xc8] sm:$0xff]   ;;  %v1089_v7 = vld [vmem:[%s1520_s24 + $0x50] sm:$0xff]   ;;  %s280_s13 = scalar_lea.vmem [#allocation7], %s921_s1  ;;  %s964_s25 = sshll.u32 %s1283_s21, 7 }
  0x7d   : > { %v1083_v2 = vld [vmem:[%s1520_s24 + $0xc0] sm:$0xff]   ;;  %966 = vmatpush3.bf16.xpose.msra.mxu0 %v1082_v1  ;;  %v1086_v6 = vld [vmem:[%s1520_s24 + $0x8] sm:$0xff]   ;;  %v1091_v9 = vld [vmem:[%s1520_s24 + $0xd0] sm:$0xff]   ;;  %v384_v34 = vshrl.u32 %v383_v33, 7  ;;  %s311_s8 = scalar_lea.vmem [#allocation8], %s922_s30  ;;  %s1583_s29 = scalar_lea.hbm %s1637_s5, %s964_s25 }
  0x7e   : > { %v1084_v3 = vld [vmem:[%s1520_s24 + $0x80] sm:$0xff]   ;;  %983 = vmatprep.subr.bf16.mxu1 %v1083_v2  ;;  %967 = vmatprep.subr.bf16.mxu0 %v1085_v4  ;;  %v1088_v8 = vld [vmem:[%s1520_s24 + $0x88] sm:$0xff]   ;;  %v1090_v10 = vld [vmem:[%s1520_s24 + $0x10] sm:$0xff]   ;;  %s792_s27 = sshll.u32 %s311_s8, 4  ;;  %s776_s11 = scalar_lea.sflag [#allocation4], %s1517_s28  ;;  %s1585_s27 = int_to_ptr.vmem [resolvable:$true] %s792_s27 }
  0x7f   : > { %984 = vmatpush3.bf16.xpose.msra.mxu1 %v1084_v3  ;;  %v1093_v11 = vld [vmem:[%s1520_s24 + $0x58] sm:$0xff]   ;;  %v1092_v12 = vld [vmem:[%s1520_s24 + $0x90] sm:$0xff]   ;;  %v1097_v15 = vld [vmem:[%s1520_s24 + $0x60] sm:$0xff]   ;;  %v1559_v35 = vsub.s32 0, %v384_v34  ;;  %v389_v37 = vsub.s32 1, %v384_v34  ;;  %v393_v38 = vsub.s32 2, %v384_v34 }
  0x80   : > { %985 = vmatprep.subr.bf16.mxu1 %v1087_v5  ;;  %v1095_v13 = vld [vmem:[%s1520_s24 + $0xd8] sm:$0xff]   ;;  %v1099_v17 = vld [vmem:[%s1520_s24 + $0xe0] sm:$0xff]   ;;  %v1101_v19 = vld [vmem:[%s1520_s24 + $0x68] sm:$0xff]   ;;  %v397_v39 = vsub.s32 3, %v384_v34  ;;  %s1205_s15 = scalar_lea.vmem %s1585_s27, 128  ;;  %p1665_p5 = scmp.ne.s32.totalorder %s1654_s9, 0 }
  0x81   : > { %v1094_v14 = vld [vmem:[%s1520_s24 + $0x18] sm:$0xff]   ;;  %v1098_v18 = vld [vmem:[%s1520_s24 + $0x20] sm:$0xff]   ;;  %v1103_v22 = vld [vmem:[%s1520_s24 + $0xe8] sm:$0xff]   ;;  %p1206_p13 = scmp.ne.s32.totalorder %s1585_s27, %s1205_s15  ;;  %s1298_s21 = smov [#allocation8]  }
  0x82   : > { %v1096_v16 = vld [vmem:[%s1520_s24 + $0x98] sm:$0xff]   ;;  %v1100_v21 = vld [vmem:[%s1520_s24 + $0xa0] sm:$0xff]   ;;  %v1102_v23 = vld [vmem:[%s1520_s24 + $0x28] sm:$0xff]   ;;  %s1209_s10 = sshll.u32 %s1298_s21, 4  ;;  %s1210_s10 = int_to_ptr.vmem [resolvable:$false] %s1209_s10 }
  0x83   : > { %v316_v20 = vld [vmem:[#allocation2] sm:$0x1]  ;;  %v1105_v24 = vld [vmem:[%s1520_s24 + $0x70] sm:$0xff]   ;;  %v1104_v25 = vld [vmem:[%s1520_s24 + $0xa8] sm:$0xff]   ;;  %p1207_p1 = pnand %p1206_p13, %p1665_p5  ;;  %s1211_s22 = scalar_lea.vmem %s1210_s10, 256 }
  0x84   : > { %981 = vmatprep.mubr.bf16.mxu0 %v316_v20  ;;  %999 = vmatprep.mubr.bf16.mxu1 %v316_v20  ;;  %v1107_v26 = vld [vmem:[%s1520_s24 + $0xf0] sm:$0xff]   ;;  %v1109_v28 = vld [vmem:[%s1520_s24 + $0x78] sm:$0xff]   ;;  %v381_v36 = vld [vmem:[%s280_s13] sm:$0xf]  ;;  %p1212_p0 = scmp.lt.s32.totalorder %s1585_s27, %s1210_s10  ;;  %p1213_p11 = scmp.lt.s32.totalorder %s1211_s22, %s1205_s15 }
  0x85   : > { %968 = vmatpush3.bf16.xpose.msra.mxu0 %v1086_v6  ;;  %v1106_v27 = vld [vmem:[%s1520_s24 + $0x30] sm:$0xff]   ;;  %v1111_v30 = vld [vmem:[%s1520_s24 + $0xf8] sm:$0xff]   ;;  %v386_v40 = vrot.slane %v381_v36, %v1559_v35  ;;  %v390_v41 = vrot.slane %v381_v36, %v389_v37  ;;  %v394_v42 = vrot.slane %v381_v36, %v393_v38  ;;  %v398_v44 = vrot.slane %v381_v36, %v397_v39  ;;  %p1208_p12 = pneg %p1207_p1 }
  0x86   : > { %969 = vmatprep.subr.bf16.mxu0 %v1089_v7  ;;  %v1108_v29 = vld [vmem:[%s1520_s24 + $0xb0] sm:$0xff]   ;;  %v1110_v31 = vld [vmem:[%s1520_s24 + $0x38] sm:$0xff]   ;;  %p1214_p3 = por %p1213_p11, %p1212_p0 }
  0x87   : > { %986 = vmatpush3.bf16.xpose.msra.mxu1 %v1088_v8  ;;  %v1112_v32 = vld [vmem:[%s1520_s24 + $0xb8] sm:$0xff]  }
  0x88   : > { %987 = vmatprep.subr.bf16.mxu1 %v1091_v9  ;;  %p1215_p2 = pnand %p1214_p3, %p1208_p12 }
  0x8d   : > { %970 = vmatpush3.bf16.xpose.msra.mxu0 %v1090_v10 }
  0x8e   : > { %971 = vmatprep.subr.bf16.mxu0 %v1093_v11 }
  0x8f   : > { %988 = vmatpush3.bf16.xpose.msra.mxu1 %v1092_v12 }
  0x90   : > { %989 = vmatprep.subr.bf16.mxu1 %v1095_v13 }
  0x95   : > { %972 = vmatpush3.bf16.xpose.msra.mxu0 %v1094_v14 }
  0x96   : > { %973 = vmatprep.subr.bf16.mxu0 %v1097_v15 }
  0x97   : > { %990 = vmatpush3.bf16.xpose.msra.mxu1 %v1096_v16 }
  0x98   : > { %991 = vmatprep.subr.bf16.mxu1 %v1099_v17 }
  0x9d   : > { %974 = vmatpush3.bf16.xpose.msra.mxu0 %v1098_v18 }
  0x9e   : > { %975 = vmatprep.subr.bf16.mxu0 %v1101_v19 }
  0x9f   : > { %992 = vmatpush3.bf16.xpose.msra.mxu1 %v1100_v21 }
  0xa0   : > { %993 = vmatprep.subr.bf16.mxu1 %v1103_v22  ;;  %v677_v22 = vld [vmem:[%s1635_s3] sm:$0x3] }
  0xa5   : > { %976 = vmatpush3.bf16.xpose.msra.mxu0 %v1102_v23  ;;  %v678_v23 = vld [vmem:[%s1636_s4] sm:$0x3] }
  0xa6   : > { %977 = vmatprep.subr.bf16.mxu0 %v1105_v24  ;;  %v705_v24 = vrot.slane %v677_v22, %v1559_v35 }
  0xa7   : > { %994 = vmatpush3.bf16.xpose.msra.mxu1 %v1104_v25  ;;  %v709_v25 = vrot.slane %v677_v22, %v389_v37 }
  0xa8   : > { %995 = vmatprep.subr.bf16.mxu1 %v1107_v26 }
  0xad   : > { %978 = vmatpush3.bf16.xpose.msra.mxu0 %v1106_v27  ;;  %v718_v27 = vrot.slane %v678_v23, %v1559_v35 }
  0xae   : > { %979 = vmatprep.subr.bf16.mxu0 %v1109_v28  ;;  %v722_v28 = vrot.slane %v678_v23, %v389_v37 }
  0xaf   : > { %996 = vmatpush3.bf16.xpose.msra.mxu1 %v1108_v29 }
  0xb0   : > { %997 = vmatprep.subr.bf16.mxu1 %v1111_v30 }
  0xb5   : > { %980 = vmatpush3.bf16.xpose.msra.mxu0 %v1110_v31 }
  0xb7   : > { %998 = vmatpush3.bf16.xpose.msra.mxu1 %v1112_v32 }
  0xbc   : > { %982 = vmatmul.mubr.bf16.vlgmr.msra.gmra.mrb[0].mxu0 %v316_v20 }
  0xbe   : > { %1000 = vmatmul.mubr.bf16.vlgmr.msra.gmra.mrb[0].mxu1 %v316_v20 }
 0x18f   : > { %v629_v43 = vpop.f32.mrb[0].mxu0 }
 0x190   : > { %v630_v45 = vadd.f32 %v629_v43, %v386_v40  ;;  %v631_v46 = vpop.f32.mrb[1].mxu0 }
 0x191   : > { %v632_v47 = vadd.f32 %v631_v46, %v390_v41  ;;  %v670_v48 = vpop.f32.mrb[0].mxu1  ;;  %v633_v49 = vpop.f32.mrb[2].mxu0 }
 0x192   : > { %v671_v50 = vadd.f32 %v670_v48, %v394_v42  ;;  %v672_v51 = vpop.f32.mrb[1].mxu1  ;;  %v634_v52 = vpop.f32.mrb[3].mxu0  ;;  %v680_v53 = vsel %vm679_vm0, %v630_v45, 0.0 }
 0x193   : > { %v673_v54 = vadd.f32 %v672_v51, %v398_v44  ;;  %v674_v55 = vpop.f32.mrb[2].mxu1  ;;  %v681_v56 = vsel %vm679_vm0, %v632_v47, 0.0 }
 0x194   : > { %v675_v57 = vpop.f32.mrb[3].mxu1  ;;  %v682_v58 = vadd.f32 %v681_v56, %v680_v53  ;;  %v739_v59 = vsel %vm679_vm0, %v671_v50, 0.0 }
 0x195   : > { %v740_v60 = vsel %vm679_vm0, %v673_v54, 0.0 }
 0x196   : > { %683 = vadd.xlane.f32.xlu0 %v682_v58  ;;  %v741_v61 = vadd.f32 %v740_v60, %v739_v59 }
 0x19a   : > { %742 = vadd.xlane.f32.xlu0 %v741_v61 }
 0x223   : > { %v684_v62 = vpop.xlane.xlu0 %683 }
 0x224   : > { %v686_v63 = vmul.f32 0.00390625, %v684_v62 }
 0x226   : > { %v687_v0 = vsub.f32 %v630_v45, %v686_v63  ;;  %v688_v1 = vsub.f32 %v632_v47, %v686_v63 }
 0x227   : > { %v743_v2 = vpop.xlane.xlu0 %742 }
 0x228   : > { %v744_v3 = vmul.f32 0.00390625, %v743_v2  ;;  %v689_v4 = vmul.f32 %v687_v0, %v687_v0  ;;  %v690_v5 = vmul.f32 %v688_v1, %v688_v1 }
 0x22a   : > { %v745_v6 = vsub.f32 %v671_v50, %v744_v3  ;;  %v746_v7 = vsub.f32 %v673_v54, %v744_v3  ;;  %v691_v8 = vsel %vm679_vm0, %v689_v4, 0.0  ;;  %v692_v9 = vsel %vm679_vm0, %v690_v5, 0.0 }
 0x22b   : > { %v693_v10 = vadd.f32 %v692_v9, %v691_v8 }
 0x22c   : > { %v747_v11 = vmul.f32 %v745_v6, %v745_v6  ;;  %v748_v12 = vmul.f32 %v746_v7, %v746_v7 }
 0x22d   : > { %694 = vadd.xlane.f32.xlu1 %v693_v10 }
 0x22e   : > { %v749_v13 = vsel %vm679_vm0, %v747_v11, 0.0  ;;  %v750_v14 = vsel %vm679_vm0, %v748_v12, 0.0 }
 0x22f   : > { %v751_v15 = vadd.f32 %v750_v14, %v749_v13 }
 0x231   : > { %752 = vadd.xlane.f32.xlu1 %v751_v15 }
 0x2ba   : > { %v695_v16 = vpop.xlane.xlu1 %694 }
 0x2bb   : > { %v696_v17 = vmul.f32 0.00390625, %v695_v16 }
 0x2bd   : > { %v697_v18 = vadd.f32 1e-05, %v696_v17 }
 0x2be   : > { %v753_v19 = vpop.xlane.xlu1 %752 }
 0x2bf   : > { %1113 = vrsqrt.f32 %v697_v18  ;;  %v754_v20 = vmul.f32 0.00390625, %v753_v19 }
 0x2c1   : > { %v755_v21 = vadd.f32 1e-05, %v754_v20 }
 0x2c3   : > { %1115 = vrsqrt.f32 %v755_v21 }
 0x2c9   : > { %v1114_v26 = vpop.eup %1113 }
 0x2ca   : > { %v699_v29 = vmul.f32 %v1114_v26, %v687_v0  ;;  %v700_v30 = vmul.f32 %v1114_v26, %v688_v1 }
 0x2cc   : > { %v712_v31 = vmul.f32 %v705_v24, %v699_v29  ;;  %v713_v32 = vmul.f32 %v709_v25, %v700_v30 }
 0x2cd   : > { %v1116_v33 = vpop.eup %1115 }
 0x2ce   : > { %v757_v34 = vmul.f32 %v1116_v33, %v745_v6  ;;  %v758_v36 = vmul.f32 %v1116_v33, %v746_v7  ;;  %v725_v38 = vadd.f32 %v718_v27, %v712_v31  ;;  %v726_v39 = vadd.f32 %v722_v28, %v713_v32 }
 0x2d0   : > { %v759_v40 = vmul.f32 %v757_v34, %v705_v24  ;;  %v760_v41 = vmul.f32 %v758_v36, %v709_v25  ;;  %v729_v42 = vcombine.low %v725_v38, %v726_v39 }
 0x2d2   : > { %955 = vst.sshfl [vmem:[%s311_s8] sm:$0x33 pattern:$0x76325410] %v729_v42  ;;  %v761_v35 = vadd.f32 %v759_v40, %v718_v27  ;;  %v762_v37 = vadd.f32 %v760_v41, %v722_v28 }
 0x2d4   : > { %v765_v43 = vcombine.low %v761_v35, %v762_v37 }
 0x2d6   : > { %956 = vst.sshfl [vmem:[%s311_s8 + $0x4] sm:$0x33 pattern:$0x76325410] %v765_v43 }
 0x2d7   : > { %1218 = shalt.err (!%p1215_p2)
}
 0x2d8   : > { %s1219_s28 = scalar_lea.hbm %s1583_s29, 128  ;;  %s1223_s13 = scalar_lea.hbm %s1637_s5, 256 }
 0x2d9   : > { %p1220_p7 = scmp.ne.s32.totalorder %s1583_s29, %s1219_s28  ;;  %p1224_p8 = scmp.lt.u32.totalorder %s1583_s29, %s1637_s5 }
 0x2da   : > { %p1225_p10 = scmp.lt.u32.totalorder %s1223_s13, %s1219_s28  ;;  %p1227_p13 = scmp.lt.u32.totalorder %s1219_s28, %s1583_s29 }
 0x2db   : > { %p1221_p6 = pnand %p1220_p7, %p1665_p5 }
 0x2dc   : > { %p1226_p9 = por %p1225_p10, %p1224_p8 }
 0x2dd   : > { %p1222_p4 = pneg %p1221_p6 }
 0x2de   : > { %p1228_p1 = por %p1227_p13, %p1226_p9 }
 0x2e0   : > { %p1229_p12 = pnand %p1228_p1, %p1222_p4 }
 0x2e2   : > { %1232 = shalt.err (!%p1229_p12)
}
 0x2e3   : > { %1009 = dma.vmem_to_hbm [thread:$0]  (%p1665_p5), %s1585_s27, 128, %s1583_s29, %s776_s11  }
 0x2e4 PF: > { %s804_s17 = sand.u32 1, %s1271_s18   ;;  %p1666_p0 = scmp.ne.s32.totalorder %s1655_s12, 0 }
 0x2e5   : > { %p1667_p11 = scmp.ge.s32.totalorder %s1291_s23, 2  ;;  %s805_s7 = scalar_lea.sflag [#allocation4], %s804_s17 }
 0x2e7   : > { %p1023_p3 = pnand %p1667_p11, %p1666_p0 }
 0x2e9   : > { %1266 = dma.done.wait (!%p1023_p3), %s805_s7, 128  }
 0x2ea   : > { %1268 = vsyncadd (!%p1023_p3), %s805_s7, 4294967168  ;;  %s22_s23 = sadd.s32 1, %s1291_s23   ;;  %s1668_s9 = sld [smem:[#allocation14_spill]] }
 0x2eb   : > { %p19_p2 = scmp.ge.s32.totalorder %s22_s23, 4   ;;  %s1669_s21 = sld [smem:[#allocation12_spill]] }
 0x2ec   : > { %s1670_s22 = sld [smem:[#allocation13_spill]]  ;;  %s1671_s18 = smov %s1275_s19 }
 0x2ed   : > { %s1672_s19 = smov %s1279_s20  ;;  %21 = sbr.rel (!%p19_p2) target bundleno = 9 (0x9), region = 102 }
 0x2f0   : > { %s1673_s20 = smov %s1668_s9 }
 0x2f4   :  { %810 = vsyncpa [#allocation3], 1 }
 0x2f5   :  { %812 = vsyncpa [#allocation3 + $0x1], 1 }
 0x2f6   :  { %813 = vsyncpa [#allocation6], 1 }
 0x2f7   :  { %815 = vsyncpa [#allocation6 + $0x1], 1 }
 0x2f8   :  { %816 = vsyncpa [#allocation4], 1 }
 0x2f9   :  { %818 = vsyncpa [#allocation4 + $0x1], 1 }

</bundles_post_ra>
